<compile_context>
chip_gen: v7x
topology: tpu7x:2x2x1
jax: 0.10.0
libtpu: 0.0.40
codegen_flags: <defaults>
</compile_context>

<pallas_src>
import functools

import jax
import jax.numpy as jnp
from jax.experimental import pallas as pl
from jax.experimental.pallas import tpu as pltpu

_LANE = 128
_EPS = 1e-5


def _round_up(x, m):
    return ((x + m - 1) // m) * m


def _dice_kernel(p_ref, t_ref, inter_ref, union_ref, *,
                 total, tile_r, num_j, masked):
    c = pl.program_id(0)   # core-split axis ("parallel")
    j = pl.program_id(1)   # reduction axis ("arbitrary")

    @pl.when(j == 0)
    def _():
        inter_ref[...] = jnp.zeros_like(inter_ref)
        union_ref[...] = jnp.zeros_like(union_ref)

    x = p_ref[...].astype(jnp.float32)
    tar = t_ref[...].astype(jnp.float32)
    # sigmoid(x) == 0.5 * (tanh(0.5 * x) + 1): single EUP op per element.
    pre = 0.5 * (jnp.tanh(0.5 * x) + 1.0)

    prod = pre * tar
    plus = pre + tar

    def accumulate(valid):
        p_c = prod if valid is None else jnp.where(valid, prod, 0.0)
        u_c = plus if valid is None else jnp.where(valid, plus, 0.0)
        # Reduce only down to one vreg (pure VPU vreg adds); the full scalar
        # reduction is deferred to the wrapper.
        inter_ref[...] += p_c.reshape(tile_r // 8, 8, _LANE).sum(axis=0)
        union_ref[...] += u_c.reshape(tile_r // 8, 8, _LANE).sum(axis=0)

    if masked:
        # Mask logically-out-of-range elements (tail rows / clamped blocks).
        block_elems = tile_r * _LANE
        logical_block = c * num_j + j
        start = logical_block * block_elems
        is_tail = start + block_elems > total

        @pl.when(is_tail)
        def _():
            rows = jax.lax.broadcasted_iota(jnp.int32, (tile_r, _LANE), 0)
            cols = jax.lax.broadcasted_iota(jnp.int32, (tile_r, _LANE), 1)
            gidx = start + rows * _LANE + cols
            accumulate(gidx < total)

        @pl.when(jnp.logical_not(is_tail))
        def _():
            accumulate(None)
    else:
        accumulate(None)


def dice_loss(predict, target, *, tile_rows=8192, n_split=2):
    assert predict.shape == target.shape, (
        "the size of predict and target must be equal.")

    p = predict.reshape(-1)
    t = target.reshape(-1)
    total = p.shape[0]

    rows = pl.cdiv(total, _LANE)
    # Pad only the partial tail row (if any); aligned inputs take a
    # zero-copy reshape path. Pad values are masked out in the kernel.
    tail_pad = rows * _LANE - total
    if tail_pad:
        p = jnp.pad(p, (0, tail_pad))
        t = jnp.pad(t, (0, tail_pad))
    p2 = p.reshape(rows, _LANE)
    t2 = t.reshape(rows, _LANE)

    # Row tile: multiple of 8 sublanes, up to ~4 MiB of f32 per input block.
    tile_r = min(int(tile_rows), _round_up(pl.cdiv(rows, n_split), 8))
    tile_r = max(8, (tile_r // 8) * 8)
    num_j = pl.cdiv(rows, n_split * tile_r)
    max_block = pl.cdiv(rows, tile_r) - 1

    # In-kernel masking is needed only when the grid's logical coverage
    # exceeds the valid element count.
    masked = (tail_pad != 0) or (n_split * num_j * tile_r != rows)

    def in_map(c, j):
        # Clamp so no block index points past the array; fully-out-of-range
        # logical blocks are zeroed by the in-kernel mask.
        return (jnp.minimum(c * num_j + j, max_block), 0)

    kernel = functools.partial(
        _dice_kernel, total=total, tile_r=tile_r, num_j=num_j, masked=masked)

    inter, union = pl.pallas_call(
        kernel,
        out_shape=(
            jax.ShapeDtypeStruct((n_split, 8, _LANE), jnp.float32),
            jax.ShapeDtypeStruct((n_split, 8, _LANE), jnp.float32),
        ),
        grid_spec=pltpu.PrefetchScalarGridSpec(
            num_scalar_prefetch=0,
            grid=(n_split, num_j),
            in_specs=[
                pl.BlockSpec((tile_r, _LANE), in_map),
                pl.BlockSpec((tile_r, _LANE), in_map),
            ],
            out_specs=(
                pl.BlockSpec((None, 8, _LANE), lambda c, j: (c, 0, 0)),
                pl.BlockSpec((None, 8, _LANE), lambda c, j: (c, 0, 0)),
            ),
        ),
        compiler_params=pltpu.CompilerParams(
            dimension_semantics=("parallel", "arbitrary"),
            vmem_limit_bytes=48 * 1024 * 1024,
        ),
    )(p2, t2)

    # Tiny finalize in plain XLA: combine per-core / per-vreg partials.
    eps = jnp.float32(_EPS)
    i_sum = jnp.sum(inter)
    u_sum = jnp.sum(union)
    return jnp.float32(1.0) - jnp.float32(2.0) * (i_sum + eps) / (u_sum + eps)


def _dice_loss_ref(predict, target):
    num = predict.shape[0]
    pre = jax.nn.sigmoid(predict).reshape(num, -1)
    tar = target.reshape(num, -1)
    eps = 1e-5
    inter = jnp.sum(pre * tar)
    union = jnp.sum(pre + tar)
    return 1.0 - 2.0 * (inter + eps) / (union + eps)


if __name__ == "__main__":
    key = jax.random.PRNGKey(0)
    k1, k2 = jax.random.split(key)
    # NCHW-shaped synthetic inputs: batch=2, channels=4, spatial=16x16
    predict = jax.random.normal(k1, (2, 4, 16, 16), dtype=jnp.float32)
    target = (
        jax.random.uniform(k2, (2, 4, 16, 16), dtype=jnp.float32) > 0.5
    ).astype(jnp.float32)

    score = jax.block_until_ready(dice_loss(predict, target))
    ref = jax.block_until_ready(_dice_loss_ref(predict, target))
    assert jnp.allclose(score, ref, atol=1e-5, rtol=1e-5), (score, ref)
    print("KERNEL_OK")
</pallas_src>

<mosaic_0001>
module attributes {stable_mosaic.version = 11 : i64} {
  func.func @_dice_kernel(%arg0: i32, %arg1: i32, %arg2: memref<8x128xf32, #tpu.memory_space<vmem>>, %arg3: memref<8x128xf32, #tpu.memory_space<vmem>>, %arg4: memref<1x8x128xf32, #tpu.memory_space<vmem>>, %arg5: memref<1x8x128xf32, #tpu.memory_space<vmem>>) attributes {dimension_semantics = [#tpu.dimension_semantics<parallel>, #tpu.dimension_semantics<arbitrary>], iteration_bounds = array<i64: 2, 1>, scalar_prefetch = 0 : i64, scratch_operands = 0 : i64, tpu.core_type = #tpu.core_type<tc>, window_params = [{transform_indices = @transform_0, window_bounds = array<i64: 8, 128>}, {transform_indices = @transform_1, window_bounds = array<i64: 8, 128>}, {transform_indices = @transform_2, window_bounds = array<i64: 1, 8, 128>}, {transform_indices = @transform_3, window_bounds = array<i64: 1, 8, 128>}]} {
    %c0_i32 = arith.constant 0 : i32
    %0 = arith.cmpi eq, %arg1, %c0_i32 : i32
    %1 = arith.extui %0 : i1 to i32
    %c0_i32_0 = arith.constant 0 : i32
    %2 = arith.cmpi ne, %1, %c0_i32_0 : i32
    scf.if %2 {
      %cst_20 = arith.constant 0.000000e+00 : f32
      %30 = vector.broadcast %cst_20 : f32 to vector<8x128xf32>
      %c0_21 = arith.constant 0 : index
      %c0_22 = arith.constant 0 : index
      %c0_23 = arith.constant 0 : index
      %31 = vector.load %arg4[%c0_21, %c0_22, %c0_23] : memref<1x8x128xf32, #tpu.memory_space<vmem>>, vector<1x8x128xf32>
      %32 = vector.shape_cast %31 : vector<1x8x128xf32> to vector<8x128xf32>
      %33 = vector.shape_cast %30 : vector<8x128xf32> to vector<1x8x128xf32>
      tpu.vector_store %arg4[%c0_21, %c0_22, %c0_23], %33 {strides = array<i32>} : memref<1x8x128xf32, #tpu.memory_space<vmem>>, vector<1x8x128xf32>,
      %cst_24 = arith.constant 0.000000e+00 : f32
      %34 = vector.broadcast %cst_24 : f32 to vector<8x128xf32>
      %c0_25 = arith.constant 0 : index
      %c0_26 = arith.constant 0 : index
      %c0_27 = arith.constant 0 : index
      %35 = vector.load %arg5[%c0_25, %c0_26, %c0_27] : memref<1x8x128xf32, #tpu.memory_space<vmem>>, vector<1x8x128xf32>
      %36 = vector.shape_cast %35 : vector<1x8x128xf32> to vector<8x128xf32>
      %37 = vector.shape_cast %34 : vector<8x128xf32> to vector<1x8x128xf32>
      tpu.vector_store %arg5[%c0_25, %c0_26, %c0_27], %37 {strides = array<i32>} : memref<1x8x128xf32, #tpu.memory_space<vmem>>, vector<1x8x128xf32>,
    } else {
    }
    %c0 = arith.constant 0 : index
    %c0_1 = arith.constant 0 : index
    %3 = vector.load %arg2[%c0, %c0_1] : memref<8x128xf32, #tpu.memory_space<vmem>>, vector<8x128xf32>
    %c0_2 = arith.constant 0 : index
    %c0_3 = arith.constant 0 : index
    %4 = vector.load %arg3[%c0_2, %c0_3] : memref<8x128xf32, #tpu.memory_space<vmem>>, vector<8x128xf32>
    %cst = arith.constant 5.000000e-01 : f32
    %5 = vector.broadcast %cst : f32 to vector<8x128xf32>
    %6 = arith.mulf %5, %3 : vector<8x128xf32>
    %7 = math.tanh %6 : vector<8x128xf32>
    %cst_4 = arith.constant 1.000000e+00 : f32
    %8 = vector.broadcast %cst_4 : f32 to vector<8x128xf32>
    %9 = arith.addf %7, %8 : vector<8x128xf32>
    %cst_5 = arith.constant 5.000000e-01 : f32
    %10 = vector.broadcast %cst_5 : f32 to vector<8x128xf32>
    %11 = arith.mulf %10, %9 : vector<8x128xf32>
    %12 = arith.mulf %11, %4 : vector<8x128xf32>
    %13 = arith.addf %11, %4 : vector<8x128xf32>
    %c0_6 = arith.constant 0 : index
    %c0_7 = arith.constant 0 : index
    %c0_8 = arith.constant 0 : index
    %14 = vector.load %arg4[%c0_6, %c0_7, %c0_8] : memref<1x8x128xf32, #tpu.memory_space<vmem>>, vector<1x8x128xf32>
    %15 = vector.shape_cast %14 : vector<1x8x128xf32> to vector<8x128xf32>
    %16 = vector.shape_cast %12 : vector<8x128xf32> to vector<1x8x128xf32>
    %cst_9 = arith.constant dense<0.000000e+00> : vector<8x128xf32>
    %17 = vector.multi_reduction <add>, %16, %cst_9 [0] : vector<1x8x128xf32> to vector<8x128xf32>
    %18 = arith.addf %15, %17 : vector<8x128xf32>
    %c0_10 = arith.constant 0 : index
    %c0_11 = arith.constant 0 : index
    %c0_12 = arith.constant 0 : index
    %19 = vector.load %arg4[%c0_10, %c0_11, %c0_12] : memref<1x8x128xf32, #tpu.memory_space<vmem>>, vector<1x8x128xf32>
    %20 = vector.shape_cast %19 : vector<1x8x128xf32> to vector<8x128xf32>
    %21 = vector.shape_cast %18 : vector<8x128xf32> to vector<1x8x128xf32>
    tpu.vector_store %arg4[%c0_10, %c0_11, %c0_12], %21 {strides = array<i32>} : memref<1x8x128xf32, #tpu.memory_space<vmem>>, vector<1x8x128xf32>,
    %c0_13 = arith.constant 0 : index
    %c0_14 = arith.constant 0 : index
    %c0_15 = arith.constant 0 : index
    %22 = vector.load %arg5[%c0_13, %c0_14, %c0_15] : memref<1x8x128xf32, #tpu.memory_space<vmem>>, vector<1x8x128xf32>
    %23 = vector.shape_cast %22 : vector<1x8x128xf32> to vector<8x128xf32>
    %24 = vector.shape_cast %13 : vector<8x128xf32> to vector<1x8x128xf32>
    %cst_16 = arith.constant dense<0.000000e+00> : vector<8x128xf32>
    %25 = vector.multi_reduction <add>, %24, %cst_16 [0] : vector<1x8x128xf32> to vector<8x128xf32>
    %26 = arith.addf %23, %25 : vector<8x128xf32>
    %c0_17 = arith.constant 0 : index
    %c0_18 = arith.constant 0 : index
    %c0_19 = arith.constant 0 : index
    %27 = vector.load %arg5[%c0_17, %c0_18, %c0_19] : memref<1x8x128xf32, #tpu.memory_space<vmem>>, vector<1x8x128xf32>
    %28 = vector.shape_cast %27 : vector<1x8x128xf32> to vector<8x128xf32>
    %29 = vector.shape_cast %26 : vector<8x128xf32> to vector<1x8x128xf32>
    tpu.vector_store %arg5[%c0_17, %c0_18, %c0_19], %29 {strides = array<i32>} : memref<1x8x128xf32, #tpu.memory_space<vmem>>, vector<1x8x128xf32>,
    return
  }
  func.func @transform_0(%arg0: i32, %arg1: i32) -> (i32, i32) {
    %c1_i32 = arith.constant 1 : i32
    %0 = arith.muli %arg0, %c1_i32 : i32
    %1 = arith.addi %0, %arg1 : i32
    %c1_i32_0 = arith.constant 1 : i32
    %2 = arith.minsi %1, %c1_i32_0 : i32
    %c0_i32 = arith.constant 0 : i32
    %c0_i32_1 = arith.constant 0 : i32
    return %2, %c0_i32 : i32, i32
  }
  func.func @transform_1(%arg0: i32, %arg1: i32) -> (i32, i32) {
    %c1_i32 = arith.constant 1 : i32
    %0 = arith.muli %arg0, %c1_i32 : i32
    %1 = arith.addi %0, %arg1 : i32
    %c1_i32_0 = arith.constant 1 : i32
    %2 = arith.minsi %1, %c1_i32_0 : i32
    %c0_i32 = arith.constant 0 : i32
    %c0_i32_1 = arith.constant 0 : i32
    return %2, %c0_i32 : i32, i32
  }
  func.func @transform_2(%arg0: i32, %arg1: i32) -> (i32, i32, i32) {
    %c0_i32 = arith.constant 0 : i32
    %c0_i32_0 = arith.constant 0 : i32
    %c0_i32_1 = arith.constant 0 : i32
    return %arg0, %c0_i32, %c0_i32_0 : i32, i32, i32
  }
  func.func @transform_3(%arg0: i32, %arg1: i32) -> (i32, i32, i32) {
    %c0_i32 = arith.constant 0 : i32
    %c0_i32_0 = arith.constant 0 : i32
    %c0_i32_1 = arith.constant 0 : i32
    return %arg0, %c0_i32, %c0_i32_0 : i32, i32, i32
  }
}

</mosaic_0001>

<bundles_post_ra>
// kernel: tpu_custom_call.1
= control target key start
LH: loop header
LB: loop body
LE: loop exit
PB: predicated region body
PF: predicated region fallthrough
CT: control target
= control target key end

     0   :  { %s1087_s0 = inlined_call_operand.hbm [shape: f32[16,128], index: 0, kind: input, shape index: {}]   ;;  %s1088_s1 = inlined_call_operand.hbm [shape: f32[16,128], index: 1, kind: input, shape index: {}]   ;;  %s1089_s2 = inlined_call_operand.hbm [shape: f32[2,8,128], index: 2, kind: output, shape index: {0}]   ;;  %s1090_s3 = inlined_call_operand.hbm [shape: f32[2,8,128], index: 3, kind: output, shape index: {1}]  }
   0x1   :  { %1095 = sst [smem:[#allocation14_spill]] %s1087_s0 }
   0x2   :  { %9 = vsyncpa [#allocation3], 0 }
   0x3   :  { %11 = vsyncpa [#allocation3 + $0x1], 0 }
   0x4   :  { %12 = vsyncpa [#allocation6], 0 }
   0x5   :  { %14 = vsyncpa [#allocation6 + $0x1], 0 }
   0x6   :  { %15 = vsyncpa [#allocation4], 0 }
   0x7   :  { %17 = vsyncpa [#allocation4 + $0x1], 0 }
   0x8   :  { %18 = vsyncpa [#allocation9], 0 }
   0x9   :  { %20 = vsyncpa [#allocation9 + $0x1], 0  ;;  %s803_s12 = smov 0   ;;  %s805_s13 = smov 0  }
   0xa   :  { %s807_s14 = smov 0   ;;  %s809_s15 = smov 0  }
   0xb   :  { %s811_s16 = smov 0   ;;  %s813_s17 = smov 0  }
   0xc   :  { %s815_s18 = smov 0   ;;  %s817_s19 = smov 0  }
   0xd   :  { %s819_s20 = smov 0  }
   0xe LB: > { %s457_s21 = sadd.s32 4294967295, %s777_s20   ;;  %s458_s22 = sadd.s32 4294967294, %s777_s20   ;;  %s777_s20 = sphi %s819_s20, %s26_s20   ;;  %s773_s19 = sphi %s817_s19, %s1119_s19   ;;  %s769_s18 = sphi %s815_s18, %s1118_s18   ;;  %s765_s17 = sphi %s813_s17, %s1117_s17   ;;  %s761_s16 = sphi %s811_s16, %s1116_s16   ;;  %s757_s15 = sphi %s809_s15, %s1115_s15   ;;  %s753_s14 = sphi %s807_s14, %s1114_s14   ;;  %s749_s13 = sphi %s805_s13, %s1113_s13   ;;  %s745_s12 = sphi %s803_s12, %s1112_s12  }
   0xf   : > { %s38_s23 = sadd.s32 1, %s773_s19  ;;  %p43_p0 = scmp.lt.s32.totalorder %s773_s19, 1 }
  0x10   : > { %p40_p1 = scmp.ge.s32.totalorder %s38_s23, 2  ;;  %s51_s24 = sadd.s32 1, %s765_s17 }
  0x11   : > { %s852_s25 = scalar_select %p43_p0, %s773_s19, 1 }
  0x12   : > { %s1121_s23 = smov (%p40_p1, %s38_s23), 0  ;;  %p58_p2 = scmp.ne.s32.totalorder %s765_s17, %s761_s16 }
  0x13   : > { %p59_p3 = scmp.eq.s32.totalorder %s777_s20, 0  ;;  %p46_p4 = scmp.lt.s32.totalorder %s1121_s23, 1 }
  0x14   : > { %p64_p5 = scmp.ne.s32.totalorder %s761_s16, %s757_s15  ;;  %p65_p7 = scmp.eq.s32.totalorder %s457_s21, 0 }
  0x15   : > { %p861_p6 = por %p59_p3, %p58_p2  ;;  %s106_s29 = ssub.s32 %s773_s19, %s1121_s23 }
  0x16   : > { %s47_s27 = scalar_select %p46_p4, %s1121_s23, 1 }
  0x17   : > { %p866_p8 = por %p65_p7, %p64_p5  ;;  %p107_p9 = scmp.eq.s32.totalorder %s106_s29, 0 }
  0x18   : > { %s48_s30 = ssub.s32 %s852_s25, %s47_s27  ;;  %s109_s4 = sadd.s32 1, %s753_s14 }
  0x19   : > { %s1097_s28 = scalar_select %p866_p8, 1, 0 }
  0x1a   : > { %p49_p10 = scmp.eq.s32.totalorder %s48_s30, 0  ;;  %p119_p11 = scmp.ne.s32.totalorder %s753_s14, %s749_s13 }
  0x1b   : > { %s875_s5 = scalar_select %p107_p9, %s753_s14, %s109_s4  }
  0x1c   : > { %s878_s6 = scalar_select %p49_p10, %s765_s17, %s51_s24  }
  0x1d   : > { %p120_p12 = scmp.eq.s32.totalorder %s457_s21, 1  ;;  %p125_p13 = scmp.ne.s32.totalorder %s749_s13, %s745_s12 }
  0x1e   : > { %p126_p0 = scmp.eq.s32.totalorder %s458_s22, 1  ;;  %p498_p4 = scmp.lt.s32.totalorder %s777_s20, 2 }
  0x1f   : > { %p884_p1 = por %p120_p12, %p119_p11  ;;  %s895_s9 = sand.u32 1, %s765_s17  }
  0x20   : > { %p889_p3 = por %p126_p0, %p125_p13  ;;  %s1092_s10 = sshll.u32 %s852_s25, 7 }
  0x21   : > { %s1098_s7 = scalar_select %p884_p1, 1, 0 }
  0x22   : > { %s1099_s8 = scalar_select %p889_p3, 1, 0 }
  0x23   : > { %s1091_s11 = sshll.u32 %s895_s9, 3  ;;  %s1100_s0 = sld [smem:[#allocation14_spill]] }
  0x24   : > { %s176_s24 = scalar_lea.vmem [#allocation2], %s1091_s11  ;;  %p910_p5 = pnand %p498_p4, %p861_p6 }
  0x25   : > { %s186_s27 = sshll.u32 %s176_s24, 4  ;;  %s173_s30 = scalar_lea.sflag [#allocation3], %s895_s9  ;;  %s914_s27 = int_to_ptr.vmem [resolvable:$true] %s186_s27 }
  0x26   : > { %p577_p11 = pneg %p910_p5 }
  0x29   : > { %s904_s22 = scalar_lea.hbm %s1100_s0, %s1092_s10  ;;  %s580_s21 = scalar_lea.hbm %s1100_s0, 256 }
  0x2a   : > { %s575_s4 = scalar_lea.hbm %s904_s22, 128  ;;  %p581_p6 = scmp.lt.u32.totalorder %s904_s22, %s1100_s0 }
  0x2b   : > { %p576_p10 = scmp.ne.s32.totalorder %s904_s22, %s575_s4  ;;  %p582_p0 = scmp.lt.u32.totalorder %s580_s21, %s575_s4 }
  0x2c   : > { %p584_p2 = scmp.lt.u32.totalorder %s575_s4, %s904_s22 }
  0x2d   : > { %p578_p12 = pnand %p577_p11, %p576_p10  ;;  %p583_p4 = por %p582_p0, %p581_p6 }
  0x2f   : > { %p579_p13 = pneg %p578_p12  ;;  %p585_p7 = por %p584_p2, %p583_p4 }
  0x31   : > { %p586_p9 = pnand %p585_p7, %p579_p13 }
  0x33   : > { %589 = shalt.err (!%p586_p9)
}
  0x34   : > { %s590_s10 = scalar_lea.vmem %s914_s27, 128  ;;  %s779_s26 = smov [#allocation2]  }
  0x35   : > { %p591_p10 = scmp.ne.s32.totalorder %s914_s27, %s590_s10  ;;  %s595_s15 = sshll.u32 %s779_s26, 4  ;;  %s596_s15 = int_to_ptr.vmem [resolvable:$false] %s595_s15 }
  0x36   : > { %s597_s11 = scalar_lea.vmem %s596_s15, 256  ;;  %p598_p1 = scmp.lt.s32.totalorder %s914_s27, %s596_s15 }
  0x37   : > { %p593_p12 = pnand %p591_p10, %p577_p11  ;;  %p599_p6 = scmp.lt.s32.totalorder %s597_s11, %s590_s10 }
  0x39   : > { %p594_p3 = pneg %p593_p12  ;;  %p600_p0 = por %p599_p6, %p598_p1 }
  0x3b   : > { %p601_p2 = pnand %p600_p0, %p594_p3 }
  0x3d   : > { %604 = shalt.err (!%p601_p2)
}
  0x3e   : > { %487 = dma.hbm_to_vmem [thread:$0]  (!%p910_p5), %s904_s22, 128, %s914_s27, %s173_s30  }
  0x3f   : > { %p1102_p7 = scmp.lt.s32.totalorder %s777_s20, 3  ;;  %p1103_p9 = scmp.ge.s32.totalorder %s777_s20, 1 }
  0x40   : > { %s1105_s10 = sshll.u32 %s852_s25, 7  ;;  %s1106_s15 = sshll.u32 %s895_s9, 3 }
  0x41   : > { %p948_p13 = pnand %p1103_p9, %p1102_p7  ;;  %s957_s26 = scalar_lea.hbm %s1088_s1, %s1105_s10 }
  0x42   : > { %s197_s11 = scalar_lea.vmem [#allocation5], %s1106_s15  ;;  %s194_s22 = scalar_lea.sflag [#allocation6], %s895_s9 }
  0x43   : > { %s1104_s4 = scalar_select %p948_p13, 1, 0 }
  0x44   : > { %s207_s0 = sshll.u32 %s197_s11, 4  ;;  %s605_s27 = scalar_lea.hbm %s957_s26, 128  ;;  %s208_s0 = int_to_ptr.vmem [resolvable:$true] %s207_s0 }
  0x45   : > { %p606_p1 = scmp.ne.s32.totalorder %s957_s26, %s605_s27  ;;  %s610_s10 = scalar_lea.hbm %s1088_s1, 256 }
  0x46   : > { %p611_p10 = scmp.lt.u32.totalorder %s957_s26, %s1088_s1  ;;  %p612_p12 = scmp.lt.u32.totalorder %s610_s10, %s605_s27 }
  0x47   : > { %p608_p3 = pnand %p606_p1, %p577_p11  ;;  %p614_p0 = scmp.lt.u32.totalorder %s605_s27, %s957_s26 }
  0x48   : > { %p613_p6 = por %p612_p12, %p611_p10 }
  0x49   : > { %p609_p4 = pneg %p608_p3 }
  0x4a   : > { %p615_p2 = por %p614_p0, %p613_p6 }
  0x4c   : > { %p616_p7 = pnand %p615_p2, %p609_p4 }
  0x4e   : > { %619 = shalt.err (!%p616_p7)
}
  0x4f   : > { %s620_s9 = scalar_lea.vmem %s208_s0, 128  ;;  %s780_s15 = smov [#allocation5]  }
  0x50   : > { %p621_p9 = scmp.ne.s32.totalorder %s208_s0, %s620_s9  ;;  %s625_s11 = sshll.u32 %s780_s15, 4  ;;  %s626_s11 = int_to_ptr.vmem [resolvable:$false] %s625_s11 }
  0x51   : > { %s627_s25 = scalar_lea.vmem %s626_s11, 256  ;;  %p628_p8 = scmp.lt.s32.totalorder %s208_s0, %s626_s11 }
  0x52   : > { %p623_p1 = pnand %p621_p9, %p577_p11  ;;  %p629_p13 = scmp.lt.s32.totalorder %s627_s25, %s620_s9 }
  0x54   : > { %p624_p3 = pneg %p623_p1  ;;  %p630_p10 = por %p629_p13, %p628_p8 }
  0x56   : > { %p631_p12 = pnand %p630_p10, %p624_p3 }
  0x58   : > { %634 = shalt.err (!%p631_p12)
}
  0x59   : > { %490 = dma.hbm_to_vmem [thread:$0]  (!%p910_p5), %s957_s26, 128, %s208_s0, %s194_s22  }
  0x5a   : > { %p1107_p4 = scmp.ne.s32.totalorder %s1104_s4, 0 }
  0x5b   : > { %s218_s27 = sand.u32 (!%p1107_p4), 1, %s761_s16   ;;  %p1108_p11 = scmp.ne.s32.totalorder (!%p1107_p4), %s1097_s28, 0 }
  0x5c   : > { %216 = sbr.rel (%p1107_p4) target bundleno = 159 (0x9f), region = 28  ;;  %s466_s30 = sshll.u32 (!%p1107_p4), %s218_s27, 3 }
  0x5d   : > { %s219_s10 = scalar_lea.sflag (!%p1107_p4), [#allocation3], %s218_s27  ;;  %s222_s21 = scalar_lea.vmem (!%p1107_p4), [#allocation2], %s466_s30 }
  0x63   : > { %728 = dma.done.wait (%p1108_p11), %s219_s10, 128  }
  0x64   : > { %730 = vsyncadd (%p1108_p11), %s219_s10, 4294967168  ;;  %s228_s24 = scalar_lea.sflag [#allocation6], %s218_s27  ;;  %s231_s9 = scalar_lea.vmem [#allocation5], %s466_s30 }
  0x65   : > { %732 = dma.done.wait (%p1108_p11), %s228_s24, 128  }
  0x66   : > { %734 = vsyncadd (%p1108_p11), %s228_s24, 4294967168  ;;  %v276_v0 = vld [vmem:[%s222_s21] sm:$0xff]  ;;  %s993_s0 = sand.u32 1, %s749_s13   ;;  %v277_v4 = vld [vmem:[%s231_s9] sm:$0xff]  ;;  %s472_s4 = sshll.u32 %s769_s18, 7 }
  0x67   : > { %v278_v1 = vmul.f32 0.5, %v276_v0  ;;  %s468_s29 = sshll.u32 %s993_s0, 3  ;;  %s1000_s27 = scalar_lea.hbm %s1089_s2, %s472_s4 }
  0x68   : > { %s256_s26 = scalar_lea.vmem [#allocation7], %s468_s29  ;;  %s263_s28 = scalar_lea.vmem [#allocation8], %s468_s29 }
  0x69   : > { %573 = vtanh.f32 %v278_v1  ;;  %s311_s22 = sshll.u32 %s256_s26, 4  ;;  %s324_s15 = sshll.u32 %s263_s28, 4  ;;  %s1002_s22 = int_to_ptr.vmem [resolvable:$true] %s311_s22  ;;  %s1009_s15 = int_to_ptr.vmem [resolvable:$true] %s324_s15 }
  0x6a   : > { %s1007_s18 = scalar_lea.hbm %s1090_s3, %s472_s4  ;;  %s293_s21 = scalar_lea.sflag [#allocation4], %s993_s0 }
  0x6b   : > { %s635_s24 = scalar_lea.vmem %s1002_s22, 128  ;;  %p1109_p5 = scmp.ne.s32.totalorder %s1098_s7, 0 }
  0x6c   : > { %p636_p8 = scmp.ne.s32.totalorder %s1002_s22, %s635_s24  ;;  %s781_s9 = smov [#allocation7]  }
  0x6d   : > { %s639_s29 = sshll.u32 %s781_s9, 4  ;;  %s640_s29 = int_to_ptr.vmem [resolvable:$false] %s639_s29 }
  0x6e   : > { %p637_p13 = pnand %p636_p8, %p1109_p5  ;;  %s641_s11 = scalar_lea.vmem %s640_s29, 256 }
  0x6f   : > { %p642_p0 = scmp.lt.s32.totalorder %s1002_s22, %s640_s29  ;;  %p643_p2 = scmp.lt.s32.totalorder %s641_s11, %s635_s24 }
  0x70   : > { %p638_p6 = pneg %p637_p13 }
  0x71   : > { %p644_p7 = por %p643_p2, %p642_p0 }
  0x73   : > { %v574_v2 = vpop.eup %573  ;;  %p645_p9 = pnand %p644_p7, %p638_p6 }
  0x74   : > { %v280_v3 = vadd.f32 1.0, %v574_v2 }
  0x76   : > { %v281_v5 = vmul.f32 0.5, %v280_v3 }
  0x78   : > { %v282_v6 = vmul.f32 %v281_v5, %v277_v4  ;;  %v283_v7 = vadd.f32 %v281_v5, %v277_v4 }
  0x7a   : > { %287 = vst [vmem:[%s256_s26] sm:$0xff] %v282_v6  ;;  %291 = vst [vmem:[%s263_s28] sm:$0xff] %v283_v7 }
  0x7b   : > { %648 = shalt.err (!%p645_p9)
}
  0x7c   : > { %s649_s4 = scalar_lea.hbm %s1000_s27, 128  ;;  %s653_s25 = scalar_lea.hbm %s1089_s2, 256 }
  0x7d   : > { %p650_p1 = scmp.ne.s32.totalorder %s1000_s27, %s649_s4  ;;  %p654_p12 = scmp.lt.u32.totalorder %s1000_s27, %s1089_s2 }
  0x7e   : > { %p655_p4 = scmp.lt.u32.totalorder %s653_s25, %s649_s4  ;;  %p657_p8 = scmp.lt.u32.totalorder %s649_s4, %s1000_s27 }
  0x7f   : > { %p651_p3 = pnand %p650_p1, %p1109_p5 }
  0x80   : > { %p656_p11 = por %p655_p4, %p654_p12 }
  0x81   : > { %p652_p10 = pneg %p651_p3 }
  0x82   : > { %p658_p13 = por %p657_p8, %p656_p11 }
  0x84   : > { %p659_p6 = pnand %p658_p13, %p652_p10 }
  0x86   : > { %662 = shalt.err (!%p659_p6)
}
  0x87   : > { %480 = dma.vmem_to_hbm [thread:$0]  (%p1109_p5), %s1002_s22, 128, %s1000_s27, %s293_s21  }
  0x88   : > { %s298_s24 = scalar_lea.sflag [#allocation9], %s993_s0  ;;  %s663_s9 = scalar_lea.vmem %s1009_s15, 128 }
  0x89   : > { %p664_p0 = scmp.ne.s32.totalorder %s1009_s15, %s663_s9  ;;  %s782_s29 = smov [#allocation8]  }
  0x8a   : > { %s667_s11 = sshll.u32 %s782_s29, 4  ;;  %s668_s11 = int_to_ptr.vmem [resolvable:$false] %s667_s11 }
  0x8b   : > { %p665_p2 = pnand %p664_p0, %p1109_p5  ;;  %s669_s4 = scalar_lea.vmem %s668_s11, 256 }
  0x8c   : > { %p670_p9 = scmp.lt.s32.totalorder %s1009_s15, %s668_s11  ;;  %p671_p1 = scmp.lt.s32.totalorder %s669_s4, %s663_s9 }
  0x8d   : > { %p666_p7 = pneg %p665_p2 }
  0x8e   : > { %p672_p3 = por %p671_p1, %p670_p9 }
  0x90   : > { %p673_p10 = pnand %p672_p3, %p666_p7 }
  0x92   : > { %676 = shalt.err (!%p673_p10)
}
  0x93   : > { %s677_s0 = scalar_lea.hbm %s1007_s18, 128  ;;  %s681_s21 = scalar_lea.hbm %s1090_s3, 256 }
  0x94   : > { %p678_p12 = scmp.ne.s32.totalorder %s1007_s18, %s677_s0  ;;  %p682_p8 = scmp.lt.u32.totalorder %s1007_s18, %s1090_s3 }
  0x95   : > { %p683_p13 = scmp.lt.u32.totalorder %s681_s21, %s677_s0  ;;  %p685_p0 = scmp.lt.u32.totalorder %s677_s0, %s1007_s18 }
  0x96   : > { %p679_p4 = pnand %p678_p12, %p1109_p5 }
  0x97   : > { %p684_p6 = por %p683_p13, %p682_p8 }
  0x98   : > { %p680_p11 = pneg %p679_p4 }
  0x99   : > { %p686_p2 = por %p685_p0, %p684_p6 }
  0x9b   : > { %p687_p7 = pnand %p686_p2, %p680_p11 }
  0x9d   : > { %690 = shalt.err (!%p687_p7)
}
  0x9e   : > { %481 = dma.vmem_to_hbm [thread:$0]  (%p1109_p5), %s1009_s15, 128, %s1007_s18, %s298_s24  }
  0x9f PF: > { %s336_s25 = sand.u32 1, %s745_s12   ;;  %p1110_p9 = scmp.ne.s32.totalorder %s1099_s8, 0 }
  0xa0   : > { %p1111_p1 = scmp.ge.s32.totalorder %s777_s20, 2  ;;  %s337_s30 = scalar_lea.sflag [#allocation4], %s336_s25 }
  0xa2   : > { %p492_p3 = pnand %p1111_p1, %p1110_p9 }
  0xa4   : > { %736 = dma.done.wait (!%p492_p3), %s337_s30, 128  }
  0xa5   : > { %738 = vsyncadd (!%p492_p3), %s337_s30, 4294967168  ;;  %s346_s10 = scalar_lea.sflag [#allocation9], %s336_s25 }
  0xa6   : > { %740 = dma.done.wait (!%p492_p3), %s346_s10, 128  }
  0xa7   : > { %742 = vsyncadd (!%p492_p3), %s346_s10, 4294967168  ;;  %s26_s20 = sadd.s32 1, %s777_s20   ;;  %s1112_s12 = smov %s749_s13 }
  0xa8   : > { %p23_p10 = scmp.ge.s32.totalorder %s26_s20, 4   ;;  %s1113_s13 = smov %s753_s14 }
  0xa9   : > { %s1114_s14 = smov %s875_s5  ;;  %s1115_s15 = smov %s761_s16 }
  0xaa   : > { %s1116_s16 = smov %s765_s17  ;;  %s1117_s17 = smov %s878_s6 }
  0xab   : > { %s1118_s18 = smov %s773_s19  ;;  %s1119_s19 = smov %s1121_s23 }
  0xac   :  { %25 = sbr.rel (!%p23_p10) target bundleno = 14 (0xe), region = 107 }
  0xb3   :  { %351 = vsyncpa [#allocation3], 1 }
  0xb4   :  { %353 = vsyncpa [#allocation3 + $0x1], 1 }
  0xb5   :  { %354 = vsyncpa [#allocation6], 1 }
  0xb6   :  { %356 = vsyncpa [#allocation6 + $0x1], 1 }
  0xb7   :  { %357 = vsyncpa [#allocation4], 1 }
  0xb8   :  { %359 = vsyncpa [#allocation4 + $0x1], 1 }
  0xb9   :  { %360 = vsyncpa [#allocation9], 1 }
  0xba   :  { %362 = vsyncpa [#allocation9 + $0x1], 1 }

</bundles_post_ra>
